<compile_context>
chip_gen: v7x
topology: tpu7x:2x2x1
jax: 0.10.0
libtpu: 0.0.40
codegen_flags: <defaults>
</compile_context>

<pallas_src>
import functools

import jax
import jax.numpy as jnp
import numpy as np
from jax.experimental import pallas as pl
from jax.experimental.pallas import tpu as pltpu


def _uvem_kernel(preds_ref, tgt_ref, lts_ref, loss_ref, cnt_ref,
                 *, m, threshold, gamma, ignore_label):
    # Zero the per-batch accumulators at the start of each batch's reduction.
    @pl.when(pl.program_id(1) == 0)
    def _():
        loss_ref[...] = jnp.zeros_like(loss_ref)
        cnt_ref[...] = jnp.zeros_like(cnt_ref)

    logits = preds_ref[0].astype(jnp.float32)     # (C, TP)  classes x pixels
    lts = lts_ref[0].astype(jnp.float32)          # (C, TP)
    tgt = tgt_ref[0]                              # (1, TP)  int32

    # --- per-pixel cross entropy over the class (sublane) axis ---
    mx = jnp.max(logits, axis=0, keepdims=True)                       # (1, TP)
    lse = mx + jnp.log(jnp.sum(jnp.exp(logits - mx), axis=0, keepdims=True))
    cls_iota = jax.lax.broadcasted_iota(jnp.int32, logits.shape, 0)   # (C, TP)
    onehot = (cls_iota == tgt).astype(jnp.float32)
    sel = jnp.sum(logits * onehot, axis=0, keepdims=True)             # (1, TP)
    valid_t = tgt != ignore_label                                     # (1, TP)
    ce = jnp.where(valid_t, lse - sel, 0.0)

    # --- uncertainty = entropy of label_t_soft ---
    # NOTE: matches the PyTorch module exactly; an lts entry that is exactly 0
    # yields NaN there too (0 * -inf).  # TODO(synk): optional xlogy clamp.
    u = jnp.sum(-lts * jnp.log(lts), axis=0, keepdims=True)           # (1, TP)

    # ce_loss[uncertainty > threshold] = 0
    ce = jnp.where(u > threshold, 0.0, ce)

    # --- get_weight(u): pick branch quadratic, clip, ONE pow per pixel ---
    if m > 0:
        wl_x = jnp.where((u <= m) & (u >= 0.0), u, 1.0)
        wl_q = jnp.clip(-1.0 / (m * m) * (wl_x - m) ** 2 + 1.0, 0.0, 1.0)
    else:
        wl_q = jnp.ones_like(u)
    if m < threshold:
        wr_x = jnp.where((u > m) & (u <= threshold), u, 0.0)
        wr_q = jnp.clip(-1.0 / ((threshold - m) ** 2) * (wr_x - m) ** 2 + 1.0,
                        0.0, 1.0)
    else:
        wr_q = jnp.zeros_like(u)
    q = jnp.where(u <= m, wl_q, wr_q)
    if gamma == 8.0:
        weight = jnp.sqrt(jnp.sqrt(jnp.sqrt(q)))
    elif gamma == 4.0:
        weight = jnp.sqrt(jnp.sqrt(q))
    elif gamma == 2.0:
        weight = jnp.sqrt(q)
    else:
        weight = q ** (1.0 / gamma)
    weight = jnp.where(u >= threshold, 0.0, weight)

    loss_terms = weight * ce                                          # (1, TP)
    valid = ((u <= threshold) & valid_t).astype(jnp.float32)          # (1, TP)

    # Lane-dense per-batch partial accumulators; reduced to scalars in JAX.
    loss_ref[...] += loss_terms[None]
    cnt_ref[...] += valid[None]


def uvem_loss(preds, targets, label_t_soft, *, m=0.1, threshold=0.7, gamma=8.0,
              class_num=7, ignore_label=-1, tile_pix=8192):
    b, c, h, w = preds.shape
    assert c == class_num
    hw = h * w

    # Free views in the native NCHW layout (no transpose).
    preds_ = preds.reshape(b, c, hw)
    lts_ = label_t_soft.reshape(b, c, hw)
    tgt_ = targets.reshape(b, 1, hw).astype(jnp.int32)

    if hw <= tile_pix:
        tile_pix = hw               # single tile: block equals full array dim
    else:
        assert tile_pix % 128 == 0
    n_tiles = -(-hw // tile_pix)
    hw_p = n_tiles * tile_pix
    if hw_p != hw:
        # Padded pixels contribute 0 loss and 0 count: targets -> ignore_label,
        # label_t_soft -> 1.0 (entropy contribution exactly 0, no NaN).
        pad = hw_p - hw
        preds_ = jnp.pad(preds_, ((0, 0), (0, 0), (0, pad)))
        lts_ = jnp.pad(lts_, ((0, 0), (0, 0), (0, pad)), constant_values=1.0)
        tgt_ = jnp.pad(tgt_, ((0, 0), (0, 0), (0, pad)),
                       constant_values=ignore_label)

    kernel = functools.partial(_uvem_kernel, m=m, threshold=threshold,
                               gamma=gamma, ignore_label=ignore_label)

    out_shape = (jax.ShapeDtypeStruct((b, 1, tile_pix), jnp.float32),
                 jax.ShapeDtypeStruct((b, 1, tile_pix), jnp.float32))

    loss_p, cnt_p = pl.pallas_call(
        kernel,
        out_shape=out_shape,
        grid_spec=pltpu.PrefetchScalarGridSpec(
            num_scalar_prefetch=0,
            grid=(b, n_tiles),
            in_specs=[
                pl.BlockSpec((1, c, tile_pix), lambda bi, pi: (bi, 0, pi)),
                pl.BlockSpec((1, 1, tile_pix), lambda bi, pi: (bi, 0, pi)),
                pl.BlockSpec((1, c, tile_pix), lambda bi, pi: (bi, 0, pi)),
            ],
            out_specs=[
                pl.BlockSpec((1, 1, tile_pix), lambda bi, pi: (bi, 0, 0)),
                pl.BlockSpec((1, 1, tile_pix), lambda bi, pi: (bi, 0, 0)),
            ],
        ),
        compiler_params=pltpu.CompilerParams(
            # Batch axis shards across TensorCores on v7x; pixel-tile axis is
            # the accumulation (reduction) axis.
            dimension_semantics=("parallel", "arbitrary")),
    )(preds_, tgt_, lts_)

    return jnp.sum(loss_p) / (jnp.sum(cnt_p) + 1e-07)


def uvem_loss_ref(preds, targets, label_t_soft, *, m=0.1, threshold=0.7,
                  gamma=8.0, class_num=7, ignore_label=-1):
    """Pure-JAX reference mirroring the PyTorch forward."""
    b, c, h, w = preds.shape
    n = b * h * w
    preds_ = jnp.transpose(preds, (0, 2, 3, 1)).reshape(n, c).astype(jnp.float32)
    lts_ = jnp.transpose(label_t_soft, (0, 2, 3, 1)).reshape(n, c).astype(jnp.float32)
    tgt_ = targets.reshape(n).astype(jnp.int32)

    lse = jax.scipy.special.logsumexp(preds_, axis=1)
    sel = jnp.take_along_axis(preds_, jnp.clip(tgt_, 0, c - 1)[:, None], axis=1)[:, 0]
    valid_t = tgt_ != ignore_label
    ce = jnp.where(valid_t, lse - sel, 0.0)

    u = jnp.sum(-lts_ * jnp.log(lts_), axis=1)
    ce = jnp.where(u > threshold, 0.0, ce)

    inv_gamma = 1.0 / gamma
    wl_x = jnp.where((u <= m) & (u >= 0.0), u, 1.0)
    wl = jnp.clip(-1.0 / m ** 2 * (wl_x - m) ** 2 + 1.0, 0.0, 1.0) ** inv_gamma
    wr_x = jnp.where((u > m) & (u <= threshold), u, 0.0)
    wr = jnp.clip(-1.0 / (threshold - m) ** 2 * (wr_x - m) ** 2 + 1.0, 0.0, 1.0) ** inv_gamma
    weight = jnp.where(u <= m, wl, wr)
    weight = jnp.where(u >= threshold, 0.0, weight)

    loss = weight * ce
    valid_cnt = jnp.sum((u <= threshold) & valid_t).astype(jnp.float32)
    return jnp.sum(loss) / (valid_cnt + 1e-07)


if __name__ == "__main__":
    key = jax.random.PRNGKey(0)
    b, c, h, w = 2, 7, 16, 16   # class_num = 7
    k1, k2, k3 = jax.random.split(key, 3)

    preds = jax.random.normal(k1, (b, c, h, w), dtype=jnp.float32)
    targets = jax.random.randint(k2, (b, h, w), -1, c)  # includes ignore_label=-1
    # label_t_soft: softmax over channel axis (mixed temperatures so that some
    # pixels have low entropy and some high).
    raw = jax.random.normal(k3, (b, c, h, w), dtype=jnp.float32) * 3.0
    label_t_soft = jax.nn.softmax(raw, axis=1)

    loss = uvem_loss(preds, targets, label_t_soft)
    loss = jax.block_until_ready(loss)

    ref = jax.block_until_ready(uvem_loss_ref(preds, targets, label_t_soft))
    np.testing.assert_allclose(np.asarray(loss), np.asarray(ref), rtol=1e-4, atol=1e-5)

    print("KERNEL_OK")
</pallas_src>

<mosaic_0001>
module attributes {stable_mosaic.version = 11 : i64} {
  func.func @_uvem_kernel(%arg0: i32, %arg1: i32, %arg2: memref<1x7x256xf32, #tpu.memory_space<vmem>>, %arg3: memref<1x1x256xi32, #tpu.memory_space<vmem>>, %arg4: memref<1x7x256xf32, #tpu.memory_space<vmem>>, %arg5: memref<1x1x256xf32, #tpu.memory_space<vmem>>, %arg6: memref<1x1x256xf32, #tpu.memory_space<vmem>>) attributes {dimension_semantics = [#tpu.dimension_semantics<parallel>, #tpu.dimension_semantics<arbitrary>], iteration_bounds = array<i64: 2, 1>, scalar_prefetch = 0 : i64, scratch_operands = 0 : i64, tpu.core_type = #tpu.core_type<tc>, window_params = [{transform_indices = @transform_0, window_bounds = array<i64: 1, 7, 256>}, {transform_indices = @transform_1, window_bounds = array<i64: 1, 1, 256>}, {transform_indices = @transform_2, window_bounds = array<i64: 1, 7, 256>}, {transform_indices = @transform_3, window_bounds = array<i64: 1, 1, 256>}, {transform_indices = @transform_4, window_bounds = array<i64: 1, 1, 256>}]} {
    %c0_i32 = arith.constant 0 : i32
    %0 = arith.cmpi eq, %arg1, %c0_i32 : i32
    %1 = arith.extui %0 : i1 to i32
    %c0_i32_0 = arith.constant 0 : i32
    %2 = arith.cmpi ne, %1, %c0_i32_0 : i32
    scf.if %2 {
      %cst_48 = arith.constant 0.000000e+00 : f32
      %101 = vector.broadcast %cst_48 : f32 to vector<1x1x256xf32>
      %c0_49 = arith.constant 0 : index
      %c0_50 = arith.constant 0 : index
      %c0_51 = arith.constant 0 : index
      %102 = vector.load %arg5[%c0_49, %c0_50, %c0_51] : memref<1x1x256xf32, #tpu.memory_space<vmem>>, vector<1x1x256xf32>
      tpu.vector_store %arg5[%c0_49, %c0_50, %c0_51], %101 {strides = array<i32>} : memref<1x1x256xf32, #tpu.memory_space<vmem>>, vector<1x1x256xf32>,
      %cst_52 = arith.constant 0.000000e+00 : f32
      %103 = vector.broadcast %cst_52 : f32 to vector<1x1x256xf32>
      %c0_53 = arith.constant 0 : index
      %c0_54 = arith.constant 0 : index
      %c0_55 = arith.constant 0 : index
      %104 = vector.load %arg6[%c0_53, %c0_54, %c0_55] : memref<1x1x256xf32, #tpu.memory_space<vmem>>, vector<1x1x256xf32>
      tpu.vector_store %arg6[%c0_53, %c0_54, %c0_55], %103 {strides = array<i32>} : memref<1x1x256xf32, #tpu.memory_space<vmem>>, vector<1x1x256xf32>,
    } else {
    }
    %c0 = arith.constant 0 : index
    %c0_1 = arith.constant 0 : index
    %c0_2 = arith.constant 0 : index
    %3 = vector.load %arg2[%c0, %c0_1, %c0_2] : memref<1x7x256xf32, #tpu.memory_space<vmem>>, vector<1x7x256xf32>
    %4 = vector.shape_cast %3 : vector<1x7x256xf32> to vector<7x256xf32>
    %c0_3 = arith.constant 0 : index
    %c0_4 = arith.constant 0 : index
    %c0_5 = arith.constant 0 : index
    %5 = vector.load %arg4[%c0_3, %c0_4, %c0_5] : memref<1x7x256xf32, #tpu.memory_space<vmem>>, vector<1x7x256xf32>
    %6 = vector.shape_cast %5 : vector<1x7x256xf32> to vector<7x256xf32>
    %c0_6 = arith.constant 0 : index
    %c0_7 = arith.constant 0 : index
    %c0_8 = arith.constant 0 : index
    %7 = vector.load %arg3[%c0_6, %c0_7, %c0_8] : memref<1x1x256xi32, #tpu.memory_space<vmem>>, vector<1x1x256xi32>
    %8 = vector.shape_cast %7 : vector<1x1x256xi32> to vector<1x256xi32>
    %cst = arith.constant dense<0xFF800000> : vector<256xf32>
    %9 = vector.multi_reduction <maximumf>, %4, %cst [0] : vector<7x256xf32> to vector<256xf32>
    %10 = vector.shape_cast %9 : vector<256xf32> to vector<1x256xf32>
    %11 = vector.broadcast %10 : vector<1x256xf32> to vector<7x256xf32>
    %12 = arith.subf %4, %11 : vector<7x256xf32>
    %13 = math.exp %12 : vector<7x256xf32>
    %cst_9 = arith.constant dense<0.000000e+00> : vector<256xf32>
    %14 = vector.multi_reduction <add>, %13, %cst_9 [0] : vector<7x256xf32> to vector<256xf32>
    %15 = vector.shape_cast %14 : vector<256xf32> to vector<1x256xf32>
    %16 = math.log %15 : vector<1x256xf32>
    %17 = arith.addf %10, %16 : vector<1x256xf32>
    %18 = tpu.iota {dimensions = array<i32: 0>} : vector<7x256xi32>
    %19 = vector.broadcast %8 : vector<1x256xi32> to vector<7x256xi32>
    %20 = arith.cmpi eq, %18, %19 : vector<7x256xi32>
    %21 = arith.extui %20 : vector<7x256xi1> to vector<7x256xi32>
    %22 = arith.sitofp %21 : vector<7x256xi32> to vector<7x256xf32>
    %23 = arith.mulf %4, %22 : vector<7x256xf32>
    %cst_10 = arith.constant dense<0.000000e+00> : vector<256xf32>
    %24 = vector.multi_reduction <add>, %23, %cst_10 [0] : vector<7x256xf32> to vector<256xf32>
    %25 = vector.shape_cast %24 : vector<256xf32> to vector<1x256xf32>
    %c-1_i32 = arith.constant -1 : i32
    %26 = vector.broadcast %c-1_i32 : i32 to vector<1x256xi32>
    %27 = arith.cmpi ne, %8, %26 : vector<1x256xi32>
    %28 = arith.subf %17, %25 : vector<1x256xf32>
    %cst_11 = arith.constant 0.000000e+00 : f32
    %29 = vector.broadcast %cst_11 : f32 to vector<1x256xf32>
    %30 = arith.select %27, %28, %29 : vector<1x256xi1>, vector<1x256xf32>
    %cst_12 = arith.constant 0.000000e+00 : f32
    %31 = vector.broadcast %cst_12 : f32 to vector<7x256xf32>
    %32 = arith.subf %31, %6 : vector<7x256xf32>
    %33 = math.log %6 : vector<7x256xf32>
    %34 = arith.mulf %32, %33 : vector<7x256xf32>
    %cst_13 = arith.constant dense<0.000000e+00> : vector<256xf32>
    %35 = vector.multi_reduction <add>, %34, %cst_13 [0] : vector<7x256xf32> to vector<256xf32>
    %36 = vector.shape_cast %35 : vector<256xf32> to vector<1x256xf32>
    %cst_14 = arith.constant 0.699999988 : f32
    %37 = vector.broadcast %cst_14 : f32 to vector<1x256xf32>
    %38 = arith.cmpf ogt, %36, %37 : vector<1x256xf32>
    %cst_15 = arith.constant 0.000000e+00 : f32
    %39 = vector.broadcast %cst_15 : f32 to vector<1x256xf32>
    %40 = arith.select %38, %39, %30 : vector<1x256xi1>, vector<1x256xf32>
    %cst_16 = arith.constant 1.000000e-01 : f32
    %41 = vector.broadcast %cst_16 : f32 to vector<1x256xf32>
    %42 = arith.cmpf ole, %36, %41 : vector<1x256xf32>
    %cst_17 = arith.constant 0.000000e+00 : f32
    %43 = vector.broadcast %cst_17 : f32 to vector<1x256xf32>
    %44 = arith.cmpf oge, %36, %43 : vector<1x256xf32>
    %45 = arith.andi %42, %44 : vector<1x256xi1>
    %cst_18 = arith.constant 1.000000e+00 : f32
    %46 = vector.broadcast %cst_18 : f32 to vector<1x256xf32>
    %47 = arith.select %45, %36, %46 : vector<1x256xi1>, vector<1x256xf32>
    %cst_19 = arith.constant 1.000000e-01 : f32
    %48 = vector.broadcast %cst_19 : f32 to vector<1x256xf32>
    %49 = arith.subf %47, %48 : vector<1x256xf32>
    %50 = arith.mulf %49, %49 : vector<1x256xf32>
    %cst_20 = arith.constant -1.000000e+02 : f32
    %51 = vector.broadcast %cst_20 : f32 to vector<1x256xf32>
    %52 = arith.mulf %51, %50 : vector<1x256xf32>
    %cst_21 = arith.constant 1.000000e+00 : f32
    %53 = vector.broadcast %cst_21 : f32 to vector<1x256xf32>
    %54 = arith.addf %52, %53 : vector<1x256xf32>
    %cst_22 = arith.constant 0.000000e+00 : f32
    %cst_23 = arith.constant 1.000000e+00 : f32
    %55 = vector.broadcast %cst_22 : f32 to vector<1x256xf32>
    %56 = arith.maximumf %55, %54 : vector<1x256xf32>
    %57 = vector.broadcast %cst_23 : f32 to vector<1x256xf32>
    %58 = arith.minimumf %57, %56 : vector<1x256xf32>
    %cst_24 = arith.constant 1.000000e-01 : f32
    %59 = vector.broadcast %cst_24 : f32 to vector<1x256xf32>
    %60 = arith.cmpf ogt, %36, %59 : vector<1x256xf32>
    %cst_25 = arith.constant 0.699999988 : f32
    %61 = vector.broadcast %cst_25 : f32 to vector<1x256xf32>
    %62 = arith.cmpf ole, %36, %61 : vector<1x256xf32>
    %63 = arith.andi %60, %62 : vector<1x256xi1>
    %cst_26 = arith.constant 0.000000e+00 : f32
    %64 = vector.broadcast %cst_26 : f32 to vector<1x256xf32>
    %65 = arith.select %63, %36, %64 : vector<1x256xi1>, vector<1x256xf32>
    %cst_27 = arith.constant 1.000000e-01 : f32
    %66 = vector.broadcast %cst_27 : f32 to vector<1x256xf32>
    %67 = arith.subf %65, %66 : vector<1x256xf32>
    %68 = arith.mulf %67, %67 : vector<1x256xf32>
    %cst_28 = arith.constant -2.77777767 : f32
    %69 = vector.broadcast %cst_28 : f32 to vector<1x256xf32>
    %70 = arith.mulf %69, %68 : vector<1x256xf32>
    %cst_29 = arith.constant 1.000000e+00 : f32
    %71 = vector.broadcast %cst_29 : f32 to vector<1x256xf32>
    %72 = arith.addf %70, %71 : vector<1x256xf32>
    %cst_30 = arith.constant 0.000000e+00 : f32
    %cst_31 = arith.constant 1.000000e+00 : f32
    %73 = vector.broadcast %cst_30 : f32 to vector<1x256xf32>
    %74 = arith.maximumf %73, %72 : vector<1x256xf32>
    %75 = vector.broadcast %cst_31 : f32 to vector<1x256xf32>
    %76 = arith.minimumf %75, %74 : vector<1x256xf32>
    %cst_32 = arith.constant 1.000000e-01 : f32
    %77 = vector.broadcast %cst_32 : f32 to vector<1x256xf32>
    %78 = arith.cmpf ole, %36, %77 : vector<1x256xf32>
    %79 = arith.select %78, %58, %76 : vector<1x256xi1>, vector<1x256xf32>
    %80 = math.sqrt %79 : vector<1x256xf32>
    %81 = math.sqrt %80 : vector<1x256xf32>
    %82 = math.sqrt %81 : vector<1x256xf32>
    %cst_33 = arith.constant 0.699999988 : f32
    %83 = vector.broadcast %cst_33 : f32 to vector<1x256xf32>
    %84 = arith.cmpf oge, %36, %83 : vector<1x256xf32>
    %cst_34 = arith.constant 0.000000e+00 : f32
    %85 = vector.broadcast %cst_34 : f32 to vector<1x256xf32>
    %86 = arith.select %84, %85, %82 : vector<1x256xi1>, vector<1x256xf32>
    %87 = arith.mulf %86, %40 : vector<1x256xf32>
    %cst_35 = arith.constant 0.699999988 : f32
    %88 = vector.broadcast %cst_35 : f32 to vector<1x256xf32>
    %89 = arith.cmpf ole, %36, %88 : vector<1x256xf32>
    %90 = arith.andi %89, %27 : vector<1x256xi1>
    %91 = arith.extui %90 : vector<1x256xi1> to vector<1x256xi32>
    %92 = arith.sitofp %91 : vector<1x256xi32> to vector<1x256xf32>
    %c0_36 = arith.constant 0 : index
    %c0_37 = arith.constant 0 : index
    %c0_38 = arith.constant 0 : index
    %93 = vector.load %arg5[%c0_36, %c0_37, %c0_38] : memref<1x1x256xf32, #tpu.memory_space<vmem>>, vector<1x1x256xf32>
    %94 = vector.shape_cast %87 : vector<1x256xf32> to vector<1x1x256xf32>
    %95 = arith.addf %93, %94 : vector<1x1x256xf32>
    %c0_39 = arith.constant 0 : index
    %c0_40 = arith.constant 0 : index
    %c0_41 = arith.constant 0 : index
    %96 = vector.load %arg5[%c0_39, %c0_40, %c0_41] : memref<1x1x256xf32, #tpu.memory_space<vmem>>, vector<1x1x256xf32>
    tpu.vector_store %arg5[%c0_39, %c0_40, %c0_41], %95 {strides = array<i32>} : memref<1x1x256xf32, #tpu.memory_space<vmem>>, vector<1x1x256xf32>,
    %c0_42 = arith.constant 0 : index
    %c0_43 = arith.constant 0 : index
    %c0_44 = arith.constant 0 : index
    %97 = vector.load %arg6[%c0_42, %c0_43, %c0_44] : memref<1x1x256xf32, #tpu.memory_space<vmem>>, vector<1x1x256xf32>
    %98 = vector.shape_cast %92 : vector<1x256xf32> to vector<1x1x256xf32>
    %99 = arith.addf %97, %98 : vector<1x1x256xf32>
    %c0_45 = arith.constant 0 : index
    %c0_46 = arith.constant 0 : index
    %c0_47 = arith.constant 0 : index
    %100 = vector.load %arg6[%c0_45, %c0_46, %c0_47] : memref<1x1x256xf32, #tpu.memory_space<vmem>>, vector<1x1x256xf32>
    tpu.vector_store %arg6[%c0_45, %c0_46, %c0_47], %99 {strides = array<i32>} : memref<1x1x256xf32, #tpu.memory_space<vmem>>, vector<1x1x256xf32>,
    return
  }
  func.func @transform_0(%arg0: i32, %arg1: i32) -> (i32, i32, i32) {
    %c0_i32 = arith.constant 0 : i32
    %c0_i32_0 = arith.constant 0 : i32
    return %arg0, %c0_i32, %arg1 : i32, i32, i32
  }
  func.func @transform_1(%arg0: i32, %arg1: i32) -> (i32, i32, i32) {
    %c0_i32 = arith.constant 0 : i32
    %c0_i32_0 = arith.constant 0 : i32
    return %arg0, %c0_i32, %arg1 : i32, i32, i32
  }
  func.func @transform_2(%arg0: i32, %arg1: i32) -> (i32, i32, i32) {
    %c0_i32 = arith.constant 0 : i32
    %c0_i32_0 = arith.constant 0 : i32
    return %arg0, %c0_i32, %arg1 : i32, i32, i32
  }
  func.func @transform_3(%arg0: i32, %arg1: i32) -> (i32, i32, i32) {
    %c0_i32 = arith.constant 0 : i32
    %c0_i32_0 = arith.constant 0 : i32
    %c0_i32_1 = arith.constant 0 : i32
    return %arg0, %c0_i32, %c0_i32_0 : i32, i32, i32
  }
  func.func @transform_4(%arg0: i32, %arg1: i32) -> (i32, i32, i32) {
    %c0_i32 = arith.constant 0 : i32
    %c0_i32_0 = arith.constant 0 : i32
    %c0_i32_1 = arith.constant 0 : i32
    return %arg0, %c0_i32, %c0_i32_0 : i32, i32, i32
  }
}

</mosaic_0001>

<bundles_post_ra>
// kernel: tpu_custom_call.1
= control target key start
LH: loop header
LB: loop body
LE: loop exit
PB: predicated region body
PF: predicated region fallthrough
CT: control target
= control target key end

     0   :  { %10 = vsyncpa [#allocation3], 0  ;;  %s1330_s0 = inlined_call_operand.vmem [shape: f32[2,7,256], index: 0, kind: input, shape index: {}]   ;;  %s1331_s1 = inlined_call_operand.vmem [shape: s32[2,1,256], index: 1, kind: input, shape index: {}]   ;;  %s1332_s2 = inlined_call_operand.vmem [shape: f32[2,7,256], index: 2, kind: input, shape index: {}]   ;;  %s1333_s3 = inlined_call_operand.hbm [shape: f32[2,1,256], index: 3, kind: output, shape index: {0}]   ;;  %s1334_s4 = inlined_call_operand.hbm [shape: f32[2,1,256], index: 4, kind: output, shape index: {1}]  }
   0x1   :  { %12 = vsyncpa [#allocation3 + $0x1], 0 }
   0x2   :  { %13 = vsyncpa [#allocation5], 0 }
   0x3   :  { %15 = vsyncpa [#allocation5 + $0x1], 0  ;;  %s1037_s15 = smov 0   ;;  %s1039_s16 = smov 0  }
   0x4   :  { %s1041_s17 = smov 0   ;;  %s1043_s18 = smov 0  }
   0x5   :  { %s1045_s19 = smov 0   ;;  %s1047_s20 = smov 0  }
   0x6 LB: > { %s776_s21 = sadd.s32 4294967295, %s1005_s20   ;;  %s777_s22 = sadd.s32 4294967294, %s1005_s20   ;;  %s1005_s20 = sphi %s1047_s20, %s21_s20   ;;  %s1001_s19 = sphi %s1045_s19, %s1345_s19   ;;  %s997_s18 = sphi %s1043_s18, %s1344_s18   ;;  %s993_s17 = sphi %s1041_s17, %s1343_s17   ;;  %s989_s16 = sphi %s1039_s16, %s1342_s16   ;;  %s985_s15 = sphi %s1037_s15, %s1341_s15  }
   0x7   : > { %s33_s23 = sadd.s32 1, %s1001_s19  ;;  %s124_s24 = sadd.s32 1, %s993_s17 }
   0x8   : > { %p35_p0 = scmp.ge.s32.totalorder %s33_s23, 2  ;;  %p134_p1 = scmp.ne.s32.totalorder %s993_s17, %s989_s16 }
   0x9   : > { %p135_p2 = scmp.eq.s32.totalorder %s776_s21, 1  ;;  %p140_p3 = scmp.ne.s32.totalorder %s989_s16, %s985_s15 }
   0xa   : > { %s1347_s23 = smov (%p35_p0, %s33_s23), 0  ;;  %p141_p5 = scmp.eq.s32.totalorder %s777_s22, 1 }
   0xb   : > { %p1077_p4 = por %p135_p2, %p134_p1  ;;  %s121_s26 = ssub.s32 %s1001_s19, %s1347_s23 }
   0xc   : > { %p780_p6 = scmp.ge.s32.totalorder %s1005_s20, 1  ;;  %p122_p7 = scmp.eq.s32.totalorder %s121_s26, 0 }
   0xd   : > { %p1084_p8 = por %p141_p5, %p140_p3  ;;  %p223_p9 = scmp.lt.s32.totalorder %s1005_s20, 3 }
   0xe   : > { %s1090_s28 = scalar_select %p122_p7, %s993_s17, %s124_s24  }
   0xf   : > { %p224_p10 = pnand %p780_p6, %p223_p9 }
  0x10   : > { %s1093_s29 = sand.u32 (!%p224_p10), 1, %s989_s16   ;;  %p276_p11 = scmp.lt.s32.totalorder (!%p224_p10), %s997_s18, 1  ;;  %v308_v0 = vlaneseq (!%p224_p10)  ;;  %v1007_v2 = vmov (!%p224_p10), 0.0   ;;  %vm319_vm1 = vcmask (!%p224_p10), 1046528   ;;  %v1008_v48 = vmov (!%p224_p10), 0  }
  0x11   : > { %227 = sbr.rel (%p224_p10) target bundleno = 158 (0x9e), region = 32  ;;  %s781_s30 = sshll.u32 (!%p224_p10), %s1093_s29, 1  ;;  %v1009_v50 = vmov (!%p224_p10), 1966171168  }
  0x12   : > { %vm1097_vm0 = vcmp.lt.s32.totalorder (!%p224_p10), %v308_v0, 256  ;;  %s1104_s6 = scalar_lea.vmem (!%p224_p10), [#allocation2], %s781_s30  ;;  %s1110_s7 = scalar_lea.vmem (!%p224_p10), [#allocation4], %s781_s30  ;;  %v1136_v22 = vshrl.u32 (!%p224_p10), %v308_v0, 7  ;;  %v399_v51 = vunpack.c.l.s4 (!%p224_p10), %v1009_v50 }
  0x13   : > { %312 = vst.msk [vmem:[%s1104_s6] sm:$0x3] (!%p224_p10), %vm1097_vm0, %v1007_v2  ;;  %313 = vst.msk [vmem:[%s1110_s7] sm:$0x3] (!%p224_p10), %vm1097_vm0, %v1007_v2  ;;  %s806_s30 = sshll.u32 (!%p224_p10), %s997_s18, 5  ;;  %s1010_s13 = smov (!%p224_p10), [#allocation4]  }
  0x14   : > { %v1146_v31 = vsub.s32 (!%p224_p10), 0, %v1136_v22  ;;  %v1152_v37 = vsub.s32 (!%p224_p10), 1, %v1136_v22  ;;  %s1225_s10 = scalar_lea.hbm (!%p224_p10), %s1334_s4, %s806_s30 }
  0x18   : > { %s1102_s5 = scalar_select %p276_p11, %s997_s18, 1 }
  0x1a   : > { %s804_s8 = sshll.u32 %s1102_s5, 4  ;;  %s785_s21 = sshll.u32 %s1102_s5, 1 }
  0x1b   : > { %s283_s11 = scalar_lea.vmem %s1330_s0, %s804_s8  ;;  %s302_s14 = scalar_lea.vmem %s1332_s2, %s804_s8 }
  0x1c   : > { %v1123_v3 = vld [vmem:[%s283_s11] sm:$0x7f]  ;;  %v1125_v4 = vld [vmem:[%s283_s11 + $0x8] sm:$0x7f]  ;;  %s292_s26 = scalar_lea.vmem %s1331_s1, %s785_s21  ;;  %s638_s5 = sshll.u32 %s1110_s7, 4  ;;  %s1227_s5 = int_to_ptr.vmem [resolvable:$true] %s638_s5 }
  0x1d   : > { %v316_v5 = vld [vmem:[%s302_s14] sm:$0x7f]  ;;  %v320_v6 = vsel %vm319_vm1, %v1123_v3, -inf  ;;  %v327_v7 = vsel %vm319_vm1, %v1125_v4, -inf  ;;  %v317_v8 = vld [vmem:[%s302_s14 + $0x8] sm:$0x7f] }
  0x1e   : > { %v321_v9 = vrot.slane %v320_v6, 4  ;;  %v328_v10 = vrot.slane %v327_v7, 4  ;;  %871 = vlog2.f32 %v316_v5  ;;  %v414_v23 = vsub.f32 0.0, %v316_v5  ;;  %v1148_v34 = vld [vmem:[%s292_s26] sm:$0x3]  ;;  %s610_s11 = scalar_lea.sflag [#allocation5], %s1093_s29 }
  0x1f   : > { %873 = vlog2.f32 %v317_v8  ;;  %v415_v27 = vsub.f32 0.0, %v317_v8  ;;  %v365_v39 = vrot.slane %v1148_v34, %v1146_v31  ;;  %vm392_vm2 = vcmp.ne.s32.totalorder %v1148_v34, 4294967295  ;;  %s895_s12 = scalar_lea.vmem %s1227_s5, 32  ;;  %s899_s14 = sshll.u32 %s1010_s13, 4  ;;  %s900_s14 = int_to_ptr.vmem [resolvable:$false] %s899_s14 }
  0x20   : > { %v322_v11 = vmax.f32 %v320_v6, %v321_v9  ;;  %v329_v12 = vmax.f32 %v327_v7, %v328_v10  ;;  %v369_v43 = vrot.slane %v1148_v34, %v1152_v37  ;;  %v541_v49 = vsel %vm392_vm2, 1, %v1008_v48  ;;  %p896_p12 = scmp.ne.s32.totalorder %s1227_s5, %s895_s12  ;;  %s901_s21 = scalar_lea.vmem %s900_s14, 64 }
  0x21   : > { %vm370_vm3 = vcmp.eq.s32.totalorder %v1136_v22, %v365_v39  ;;  %v545_v58 = vrot.slane %v541_v49, %v1146_v31  ;;  %v400_v6 = vunpack.c.0.s8 %v399_v51  ;;  %v549_v9 = vrot.slane %v541_v49, %v1152_v37  ;;  %p902_p1 = scmp.lt.s32.totalorder %s1227_s5, %s900_s14  ;;  %p903_p2 = scmp.lt.s32.totalorder %s901_s21, %s895_s12 }
  0x22   : > { %v323_v13 = vrot.slane %v322_v11, 2  ;;  %v330_v14 = vrot.slane %v329_v12, 2  ;;  %vm371_vm4 = vcmp.eq.s32.totalorder %v1136_v22, %v369_v43  ;;  %v788_v53 = vsel %vm370_vm3, 1.0, %v1007_v2  ;;  %p897_p13 = pnand %p896_p12, %p1077_p4 }
  0x23   : > { %v789_v0 = vsel %vm371_vm4, 1.0, %v1007_v2  ;;  %v376_v5 = vmul.f32 %v788_v53, %v1123_v3  ;;  %vm1183_vm12 = vcmp.ne.s32.totalorder %v545_v58, 0  ;;  %vm551_vm4 = vcmp.ne.s32.totalorder %v549_v9, 0  ;;  %p904_p3 = por %p903_p2, %p902_p1 }
  0x24   : > { %v324_v15 = vmax.f32 %v322_v11, %v323_v13  ;;  %v331_v16 = vmax.f32 %v329_v12, %v330_v14  ;;  %v377_v14 = vmul.f32 %v789_v0, %v1125_v4  ;;  %p898_p0 = pneg %p897_p13 }
  0x26   : > { %v325_v17 = vrot.slane %v324_v15, 1  ;;  %v332_v18 = vrot.slane %v331_v16, 1  ;;  %p905_p5 = pnand %p904_p3, %p898_p0 }
  0x28   : > { %v1132_v19 = vmax.f32 %v324_v15, %v325_v17  ;;  %v1134_v20 = vmax.f32 %v331_v16, %v332_v18  ;;  %v872_v21 = vpop.eup %871  ;;  %v1199_v18 = vsub.s32 %v400_v6, %v1136_v22 }
  0x29   : > { %v874_v26 = vpop.eup %873  ;;  %v417_v28 = vmul.f32 0.6931472, %v872_v21 }
  0x2a   : > { %v334_v24 = vsub.f32 %v1123_v3, %v1132_v19  ;;  %v335_v25 = vsub.f32 %v1125_v4, %v1134_v20  ;;  %v419_v32 = vmul.f32 0.6931472, %v874_v26 }
  0x2b   : > { %v420_v33 = vmul.f32 %v417_v28, %v414_v23 }
  0x2c   : > { %v336_v29 = vmul.f32 1.442695, %v334_v24  ;;  %v338_v30 = vmul.f32 1.442695, %v335_v25  ;;  %v421_v35 = vmul.f32 %v419_v32, %v415_v27  ;;  %v378_v27 = vsel %vm319_vm1, %v376_v5, 0.0 }
  0x2d   : > { %v422_v36 = vsel %vm319_vm1, %v420_v33, 0.0 }
  0x2e   : > { %875 = vpow2.f32 %v336_v29  ;;  %v423_v38 = vrot.slane %v422_v36, 4  ;;  %v429_v40 = vsel %vm319_vm1, %v421_v35, 0.0 }
  0x2f   : > { %877 = vpow2.f32 %v338_v30  ;;  %v430_v42 = vrot.slane %v429_v40, 4  ;;  %v385_v30 = vsel %vm319_vm1, %v377_v14, 0.0 }
  0x30   : > { %v424_v41 = vadd.f32 %v423_v38, %v422_v36  ;;  %v386_v48 = vrot.slane %v385_v30, 4 }
  0x31   : > { %v431_v45 = vadd.f32 %v430_v42, %v429_v40 }
  0x32   : > { %v425_v44 = vrot.slane %v424_v41, 2  ;;  %v387_v0 = vadd.f32 %v386_v48, %v385_v30 }
  0x33   : > { %v432_v47 = vrot.slane %v431_v45, 2 }
  0x34   : > { %v426_v46 = vadd.f32 %v425_v44, %v424_v41 }
  0x35   : > { %v433_v55 = vadd.f32 %v432_v47, %v431_v45  ;;  %v379_v47 = vrot.slane %v378_v27, 4 }
  0x36   : > { %v427_v54 = vrot.slane %v426_v46, 1 }
  0x37   : > { %v434_v62 = vrot.slane %v433_v55, 1 }
  0x38   : > { %v876_v52 = vpop.eup %875  ;;  %v1168_v61 = vadd.f32 %v427_v54, %v426_v46 }
  0x39   : > { %v878_v56 = vpop.eup %877  ;;  %v340_v57 = vsel %vm319_vm1, %v876_v52, 0.0  ;;  %v1172_v8 = vadd.f32 %v434_v62, %v433_v55 }
  0x3a   : > { %v341_v59 = vrot.slane %v340_v57, 4  ;;  %v347_v60 = vsel %vm319_vm1, %v878_v56, 0.0  ;;  %vm451_vm5 = vcmp.le.f32.partialorder %v1168_v61, 0.1  ;;  %vm453_vm6 = vcmp.ge.f32.partialorder %v1168_v61, 0.0 }
  0x3b   : > { %v348_v63 = vrot.slane %v347_v60, 4  ;;  %vm471_vm7 = vcmp.gt.f32.partialorder %v1168_v61, 0.1  ;;  %vm473_vm8 = vcmp.le.f32.partialorder %v1168_v61, 0.7  ;;  %vm454_vm10 = vcmp.ge.f32.partialorder %v1172_v8, 0.0  ;;  %vm455_vm11 = vmand %vm451_vm5, %vm453_vm6 }
  0x3c   : > { %v342_v7 = vadd.f32 %v341_v59, %v340_v57  ;;  %vm452_vm9 = vcmp.le.f32.partialorder %v1172_v8, 0.1  ;;  %v457_v13 = vsel %vm455_vm11, %v1168_v61, 1.0  ;;  %vm472_vm14 = vcmp.gt.f32.partialorder %v1172_v8, 0.1  ;;  %vm475_vm3 = vmand %vm471_vm7, %vm473_vm8 }
  0x3d   : > { %v349_v10 = vadd.f32 %v348_v63, %v347_v60  ;;  %vm456_vm13 = vmand %vm452_vm9, %vm454_vm10  ;;  %vm474_vm15 = vcmp.le.f32.partialorder %v1172_v8, 0.7  ;;  %v790_v16 = vadd.f32 -0.1, %v457_v13  ;;  %v477_v23 = vsel %vm475_vm3, %v1168_v61, 0.0 }
  0x3e   : > { %v343_v11 = vrot.slane %v342_v7, 2  ;;  %v458_v15 = vsel %vm456_vm13, %v1172_v8, 1.0  ;;  %vm476_vm6 = vmand %vm472_vm14, %vm474_vm15  ;;  %v792_v26 = vadd.f32 -0.1, %v477_v23  ;;  %v380_v63 = vadd.f32 %v379_v47, %v378_v27 }
  0x3f   : > { %v350_v12 = vrot.slane %v349_v10, 2  ;;  %v791_v21 = vadd.f32 -0.1, %v458_v15  ;;  %v461_v24 = vmul.f32 %v790_v16, %v790_v16  ;;  %v478_v25 = vsel %vm476_vm6, %v1172_v8, 0.0  ;;  %vm552_vm7 = vmand %vm473_vm8, %vm1183_vm12 }
  0x40   : > { %v344_v17 = vadd.f32 %v343_v11, %v342_v7  ;;  %v793_v28 = vadd.f32 -0.1, %v478_v25  ;;  %vm553_vm10 = vmand %vm474_vm15, %vm551_vm4  ;;  %v794_v29 = vsel %vm552_vm7, 1.0, %v1007_v2  ;;  %v481_v33 = vmul.f32 %v792_v26, %v792_v26 }
  0x41   : > { %v351_v4 = vadd.f32 %v350_v12, %v349_v10  ;;  %v462_v22 = vmul.f32 %v791_v21, %v791_v21  ;;  %v463_v32 = vmul.f32 -100.0, %v461_v24  ;;  %v795_v35 = vsel %vm553_vm10, 1.0, %v1007_v2  ;;  %v583_v2 = vld [vmem:[%s1110_s7] sm:$0x3] }
  0x42   : > { %v345_v36 = vrot.slane %v344_v17, 1  ;;  %v482_v39 = vmul.f32 %v793_v28, %v793_v28  ;;  %v586_v40 = vcombine.low %v794_v29, %v795_v35  ;;  %v483_v43 = vmul.f32 -2.7777777, %v481_v33 }
  0x43   : > { %v464_v38 = vmul.f32 -100.0, %v462_v22  ;;  %v352_v41 = vrot.slane %v351_v4, 1  ;;  %v465_v42 = vadd.f32 1.0, %v463_v32 }
  0x44   : > { %v484_v45 = vmul.f32 -2.7777777, %v482_v39  ;;  %v593_v46 = vrot.slane %v586_v40, %v1199_v18  ;;  %v485_v50 = vadd.f32 1.0, %v483_v43  ;;  %v346_v51 = vadd.f32 %v345_v36, %v344_v17 }
  0x45   : > { %v466_v44 = vadd.f32 1.0, %v464_v38  ;;  %v467_v49 = vmax.f32 %v465_v42, 0.0  ;;  %v353_v55 = vadd.f32 %v352_v41, %v351_v4 }
  0x46   : > { %v486_v53 = vadd.f32 1.0, %v484_v45  ;;  %v600_v54 = vrot.slane %v593_v46, %v1199_v18  ;;  %v487_v57 = vmax.f32 %v485_v50, 0.0  ;;  %879 = vlog2.f32 %v346_v51 }
  0x47   : > { %v468_v52 = vmax.f32 %v466_v44, 0.0  ;;  %v469_v56 = vmin.f32 %v467_v49, 1.0  ;;  %881 = vlog2.f32 %v353_v55 }
  0x48   : > { %v488_v59 = vmax.f32 %v486_v53, 0.0  ;;  %v602_v60 = vadd.f32 %v600_v54, %v583_v2  ;;  %v489_v62 = vmin.f32 %v487_v57, 1.0 }
  0x49   : > { %v470_v58 = vmin.f32 %v468_v52, 1.0 }
  0x4a   : > { %v490_v5 = vmin.f32 %v488_v59, 1.0  ;;  %603 = vst.msk [vmem:[%s1110_s7] sm:$0x3] %vm1097_vm0, %v602_v60  ;;  %v491_v6 = vsel %vm451_vm5, %v469_v56, %v489_v62 }
  0x4b   : > { %908 = shalt.err (!%p905_p5)
}
  0x4c   : > { %s909_s7 = scalar_lea.hbm %s1225_s10, 32  ;;  %s913_s26 = scalar_lea.hbm %s1334_s4, 64 }
  0x4d   : > { %p910_p6 = scmp.ne.s32.totalorder %s1225_s10, %s909_s7  ;;  %p914_p10 = scmp.lt.u32.totalorder %s1225_s10, %s1334_s4 }
  0x4e   : > { %p915_p11 = scmp.lt.u32.totalorder %s913_s26, %s909_s7  ;;  %p917_p13 = scmp.lt.u32.totalorder %s909_s7, %s1225_s10 }
  0x4f   : > { %p911_p7 = pnand %p910_p6, %p1077_p4 }
  0x50   : > { %p916_p12 = por %p915_p11, %p914_p10 }
  0x51   : > { %p912_p9 = pneg %p911_p7 }
  0x52   : > { %p918_p0 = por %p917_p13, %p916_p12 }
  0x54   : > { %p919_p1 = pnand %p918_p0, %p912_p9 }
  0x56   : > { %922 = shalt.err (!%p919_p1)
}
  0x57   : > { %809 = dma.vmem_to_hbm [thread:$0]  (%p1077_p4), %s1227_s5, 32, %s1225_s10, %s610_s11   ;;  %v492_v7 = vsel %vm452_vm9, %v470_v58, %v490_v5  ;;  %883 = vrsqrt.f32 %v491_v6  ;;  %v381_v9 = vrot.slane %v380_v63, 2  ;;  %v388_v10 = vrot.slane %v387_v0, 2  ;;  %v880_v12 = vpop.eup %879 }
  0x58   : > { %885 = vrsqrt.f32 %v492_v7  ;;  %v882_v13 = vpop.eup %881  ;;  %vm495_vm1 = vcmp.eq.f32.partialorder %v491_v6, inf  ;;  %v498_v17 = vand.u32 2147483648, %v491_v6  ;;  %vm497_vm5 = vcmp.eq.f32.partialorder %v491_v6, 0.0  ;;  %s624_s5 = sshll.u32 %s1104_s6, 4  ;;  %s1279_s12 = scalar_lea.hbm %s1333_s3, %s806_s30  ;;  %s1281_s5 = int_to_ptr.vmem [resolvable:$true] %s624_s5 }
  0x59   : > { %v382_v11 = vadd.f32 %v381_v9, %v380_v63  ;;  %v389_v3 = vadd.f32 %v388_v10, %v387_v0  ;;  %vm502_vm8 = vcmp.eq.f32.partialorder %v492_v7, inf  ;;  %v505_v4 = vand.u32 2147483648, %v492_v7  ;;  %s605_s13 = scalar_lea.sflag [#allocation3], %s1093_s29  ;;  %s923_s14 = scalar_lea.vmem %s1281_s5, 32 }
  0x5a   : > { %v355_v24 = vmul.f32 0.6931472, %v880_v12  ;;  %v357_v25 = vmul.f32 0.6931472, %v882_v13  ;;  %vm504_vm9 = vcmp.eq.f32.partialorder %v492_v7, 0.0  ;;  %p924_p2 = scmp.ne.s32.totalorder %s1281_s5, %s923_s14  ;;  %s1011_s18 = smov [#allocation2]  }
  0x5b   : > { %v383_v15 = vrot.slane %v382_v11, 1  ;;  %v390_v16 = vrot.slane %v389_v3, 1  ;;  %vm436_vm15 = vcmp.gt.f32.partialorder %v1168_v61, 0.7  ;;  %vm437_vm6 = vcmp.gt.f32.partialorder %v1172_v8, 0.7 }
  0x5c   : > { %v358_v30 = vadd.f32 %v355_v24, %v1132_v19  ;;  %v359_v32 = vadd.f32 %v357_v25, %v1134_v20  ;;  %vm535_vm10 = vcmp.ge.f32.partialorder %v1168_v61, 0.7  ;;  %p925_p3 = pnand %p924_p2, %p1077_p4  ;;  %s927_s21 = sshll.u32 %s1011_s18, 4  ;;  %s928_s21 = int_to_ptr.vmem [resolvable:$false] %s927_s21 }
  0x5d   : > { %v384_v33 = vadd.f32 %v383_v15, %v382_v11  ;;  %v391_v35 = vadd.f32 %v390_v16, %v389_v3  ;;  %s929_s7 = scalar_lea.vmem %s928_s21, 64  ;;  %p930_p6 = scmp.lt.s32.totalorder %s1281_s5, %s928_s21 }
  0x5e   : > { %p926_p5 = pneg %p925_p3  ;;  %p931_p7 = scmp.lt.s32.totalorder %s929_s7, %s923_s14 }
  0x5f   : > { %v393_v36 = vsub.f32 %v358_v30, %v384_v33  ;;  %v394_v38 = vsub.f32 %v359_v32, %v391_v35 }
  0x60   : > { %p932_p9 = por %p931_p7, %p930_p6 }
  0x61   : > { %v884_v14 = vpop.eup %883  ;;  %v397_v39 = vcombine.low %v393_v36, %v394_v38 }
  0x62   : > { %v886_v21 = vpop.eup %885  ;;  %v494_v23 = vmul.f32 %v884_v14, %v491_v6  ;;  %p933_p10 = pnand %p932_p9, %p926_p5 }
  0x63   : > { %v501_v26 = vmul.f32 %v886_v21, %v492_v7  ;;  %v404_v45 = vrot.slane %v397_v39, %v1199_v18 }
  0x64   : > { %v496_v27 = vsel %vm495_vm1, %v491_v6, %v494_v23  ;;  %vm536_vm1 = vcmp.ge.f32.partialorder %v1172_v8, 0.7 }
  0x65   : > { %v499_v22 = vsel %vm497_vm5, %v498_v17, %v496_v27  ;;  %v503_v28 = vsel %vm502_vm8, %v492_v7, %v501_v26  ;;  %v411_v49 = vrot.slane %v404_v45, %v1199_v18  ;;  %v558_v7 = vld [vmem:[%s1104_s6] sm:$0x3] }
  0x66   : > { %v506_v29 = vsel %vm504_vm9, %v505_v4, %v503_v28  ;;  %887 = vrsqrt.f32 %v499_v22  ;;  %vm509_vm11 = vcmp.eq.f32.partialorder %v499_v22, inf  ;;  %v512_v41 = vand.u32 2147483648, %v499_v22 }
  0x67   : > { %889 = vrsqrt.f32 %v506_v29  ;;  %vm511_vm12 = vcmp.eq.f32.partialorder %v499_v22, 0.0  ;;  %vm516_vm13 = vcmp.eq.f32.partialorder %v506_v29, inf  ;;  %v519_v44 = vand.u32 2147483648, %v506_v29 }
  0x68   : > { %vm518_vm14 = vcmp.eq.f32.partialorder %v506_v29, 0.0  ;;  %v413_v50 = vsel %vm392_vm2, %v411_v49, 0.0 }
  0x69   : > { %v442_v2 = vrot.slane %v413_v50, %v1146_v31  ;;  %v446_v53 = vrot.slane %v413_v50, %v1152_v37 }
  0x6b   : > { %v449_v34 = vsel %vm436_vm15, 0.0, %v442_v2  ;;  %v450_v37 = vsel %vm437_vm6, 0.0, %v446_v53 }
  0x70   : > { %v888_v40 = vpop.eup %887 }
  0x71   : > { %v508_v42 = vmul.f32 %v888_v40, %v499_v22  ;;  %v890_v43 = vpop.eup %889 }
  0x72   : > { %v515_v19 = vmul.f32 %v890_v43, %v506_v29 }
  0x73   : > { %v510_v46 = vsel %vm509_vm11, %v499_v22, %v508_v42 }
  0x74   : > { %v513_v20 = vsel %vm511_vm12, %v512_v41, %v510_v46  ;;  %v517_v47 = vsel %vm516_vm13, %v506_v29, %v515_v19 }
  0x75   : > { %891 = vrsqrt.f32 %v513_v20  ;;  %v520_v48 = vsel %vm518_vm14, %v519_v44, %v517_v47  ;;  %vm523_vm3 = vcmp.eq.f32.partialorder %v513_v20, inf  ;;  %v526_v52 = vand.u32 2147483648, %v513_v20 }
  0x76   : > { %893 = vrsqrt.f32 %v520_v48  ;;  %vm525_vm4 = vcmp.eq.f32.partialorder %v513_v20, 0.0  ;;  %vm530_vm7 = vcmp.eq.f32.partialorder %v520_v48, inf  ;;  %v533_v56 = vand.u32 2147483648, %v520_v48 }
  0x77   : > { %vm532_vm2 = vcmp.eq.f32.partialorder %v520_v48, 0.0 }
  0x7f   : > { %v892_v51 = vpop.eup %891 }
  0x80   : > { %v522_v54 = vmul.f32 %v892_v51, %v513_v20  ;;  %v894_v55 = vpop.eup %893 }
  0x81   : > { %v529_v57 = vmul.f32 %v894_v55, %v520_v48 }
  0x82   : > { %v524_v31 = vsel %vm523_vm3, %v513_v20, %v522_v54 }
  0x83   : > { %v527_v58 = vsel %vm525_vm4, %v526_v52, %v524_v31  ;;  %v531_v59 = vsel %vm530_vm7, %v520_v48, %v529_v57 }
  0x84   : > { %v537_v60 = vsel %vm535_vm10, 0.0, %v527_v58  ;;  %v534_v62 = vsel %vm532_vm2, %v533_v56, %v531_v59 }
  0x85   : > { %v539_v63 = vmul.f32 %v537_v60, %v449_v34  ;;  %v538_v0 = vsel %vm536_vm1, 0.0, %v534_v62 }
  0x86   : > { %v540_v61 = vmul.f32 %v538_v0, %v450_v37 }
  0x88   : > { %v561_v5 = vcombine.low %v539_v63, %v540_v61 }
  0x8a   : > { %v568_v6 = vrot.slane %v561_v5, %v1199_v18 }
  0x8c   : > { %v575_v9 = vrot.slane %v568_v6, %v1199_v18 }
  0x8e   : > { %v577_v10 = vadd.f32 %v575_v9, %v558_v7 }
  0x90   : > { %582 = vst.msk [vmem:[%s1104_s6] sm:$0x3] %vm1097_vm0, %v577_v10 }
  0x91   : > { %936 = shalt.err (!%p933_p10)
}
  0x92   : > { %s937_s29 = scalar_lea.hbm %s1279_s12, 32  ;;  %s941_s22 = scalar_lea.hbm %s1333_s3, 64 }
  0x93   : > { %p938_p11 = scmp.ne.s32.totalorder %s1279_s12, %s937_s29  ;;  %p942_p0 = scmp.lt.u32.totalorder %s1279_s12, %s1333_s3 }
  0x94   : > { %p943_p1 = scmp.lt.u32.totalorder %s941_s22, %s937_s29  ;;  %p945_p3 = scmp.lt.u32.totalorder %s937_s29, %s1279_s12 }
  0x95   : > { %p939_p12 = pnand %p938_p11, %p1077_p4 }
  0x96   : > { %p944_p2 = por %p943_p1, %p942_p0 }
  0x97   : > { %p940_p13 = pneg %p939_p12 }
  0x98   : > { %p946_p5 = por %p945_p3, %p944_p2 }
  0x9a   : > { %p947_p6 = pnand %p946_p5, %p940_p13 }
  0x9c   : > { %950 = shalt.err (!%p947_p6)
}
  0x9d   : > { %808 = dma.vmem_to_hbm [thread:$0]  (%p1077_p4), %s1281_s5, 32, %s1279_s12, %s605_s13  }
  0x9e PF: > { %p819_p7 = scmp.ge.s32.totalorder %s1005_s20, 2  ;;  %s650_s8 = sand.u32 1, %s985_s15  }
  0x9f   : > { %s651_s9 = scalar_lea.sflag [#allocation3], %s650_s8 }
  0xa0   : > { %p813_p9 = pnand %p819_p7, %p1084_p8 }
  0xa2   : > { %976 = dma.done.wait (!%p813_p9), %s651_s9, 32  }
  0xa3   : > { %978 = vsyncadd (!%p813_p9), %s651_s9, 4294967264  ;;  %s660_s10 = scalar_lea.sflag [#allocation5], %s650_s8 }
  0xa4   : > { %980 = dma.done.wait (!%p813_p9), %s660_s10, 32  }
  0xa5   : > { %982 = vsyncadd (!%p813_p9), %s660_s10, 4294967264  ;;  %s21_s20 = sadd.s32 1, %s1005_s20   ;;  %s1341_s15 = smov %s989_s16 }
  0xa6   : > { %p18_p10 = scmp.ge.s32.totalorder %s21_s20, 4   ;;  %s1342_s16 = smov %s993_s17 }
  0xa7   : > { %s1343_s17 = smov %s1090_s28  ;;  %s1344_s18 = smov %s1001_s19 }
  0xa8   : > { %s1345_s19 = smov %s1347_s23  ;;  %20 = sbr.rel (!%p18_p10) target bundleno = 6 (0x6), region = 94 }
  0xaf   :  { %665 = vsyncpa [#allocation3], 1 }
  0xb0   :  { %667 = vsyncpa [#allocation3 + $0x1], 1 }
  0xb1   :  { %668 = vsyncpa [#allocation5], 1 }
  0xb2   :  { %670 = vsyncpa [#allocation5 + $0x1], 1 }

</bundles_post_ra>
